<compile_context>
chip_gen: v5e
topology: v5e:2x2
jax: 0.10.0
libtpu: 0.0.40
codegen_flags: <defaults>
</compile_context>

<pallas_src>
import functools
import math

import jax
import jax.numpy as jnp
from jax import lax
from jax.experimental import pallas as pl
from jax.experimental.pallas import tpu as pltpu

PAD_token = 0


def _lstm_decoder_kernel(ids_ref, len_ref, embed_ref, wih_t_ref, whh_t_ref,
                         b_ref, h0_ref, c0_ref,
                         out_ref, h_out_ref, c_out_ref,
                         x_vmem, xg_vmem, *, max_len, hidden):
    """Fused embedding gather + full LSTM recurrence (batch = 1).

    ids_ref    : (max_len,) i32   SMEM  token ids (PAD-padded to max_len)
    len_ref    : (1,)       i32   SMEM  actual sentence length
    embed_ref  : (vocab, H) f32   VMEM  embedding table (PAD row is zero)
    wih_t_ref  : (H, 4H)    bf16  VMEM  input->gates weights (pre-transposed)
    whh_t_ref  : (H, 4H)    bf16  VMEM  hidden->gates weights (pre-transposed)
    b_ref      : (1, 4H)    f32   VMEM  b_ih + b_hh (pre-combined)
    h0_ref/c0_ref : (1, H)  f32   VMEM  initial states
    out_ref    : (max_len, H) f32 VMEM  outputs buffer (rows >= len stay 0)
    h_out_ref/c_out_ref : (1, H)  f32   final states
    x_vmem     : (max_len, H)  f32  scratch: gathered embeddings
    xg_vmem    : (max_len, 4H) f32  scratch: hoisted input projection
    """
    H = hidden

    # Zero the whole outputs buffer once (tiny dense store); rows [0, n) are
    # overwritten below, rows >= n must stay zero like the module's
    # pre-zeroed `self.outputs`.
    out_ref[...] = jnp.zeros_like(out_ref)

    # ---- fused embedding gather (ids in SMEM, table in VMEM) ----
    # max_len is a small static; per-row dynamic-offset load from the table,
    # static row store into the staging scratch.  For much larger max_len,
    # switch this to a lax.fori_loop to bound the unrolled instruction count.
    for t in range(max_len):
        tok = ids_ref[t]
        x_vmem[t:t + 1, :] = embed_ref[pl.ds(tok, 1), :]

    # ---- hoisted input projection: one MXU matmul covers all timesteps ----
    # bf16 operands (MXU-native), f32 accumulation; staged in VMEM so the
    # recurrence can index rows with a dynamic timestep.
    xg_vmem[...] = (jnp.dot(x_vmem[...].astype(jnp.bfloat16), wih_t_ref[...],
                            preferred_element_type=jnp.float32)
                    + b_ref[...])

    whh_t = whh_t_ref[...]                                    # (H, 4H) bf16

    # Runtime length, clamped: OOB VMEM stores are unchecked on TPU.
    n = jnp.minimum(len_ref[0], jnp.int32(max_len))

    def step(t, carry):
        h, c = carry                                          # (1, H) f32
        # Only serial-chain MXU work left per step: (1,H)x(H,4H) in bf16.
        gates = (xg_vmem[pl.ds(t, 1), :]
                 + jnp.dot(h.astype(jnp.bfloat16), whh_t,
                           preferred_element_type=jnp.float32))  # (1, 4H) f32
        # Two full-vreg EUP ops; 4H == 128 lanes so `gates` is exactly one
        # vreg row and the static 32-lane per-gate slices below are cheap
        # masked VPU selects, not cross-lane shuffles.  PyTorch gate order is
        # i, f, g, o.
        sig = jax.nn.sigmoid(gates)
        tnh = jnp.tanh(gates)
        i_g = sig[:, 0 * H:1 * H]
        f_g = sig[:, 1 * H:2 * H]
        g_g = tnh[:, 2 * H:3 * H]
        o_g = sig[:, 3 * H:4 * H]
        c_new = f_g * c + i_g * g_g
        h_new = o_g * jnp.tanh(c_new)
        # self.outputs[self.output_pointer] = o[0][0]; pointer == t.
        out_ref[pl.ds(t, 1), :] = h_new
        return (h_new, c_new)

    h_fin, c_fin = lax.fori_loop(0, n, step, (h0_ref[...], c0_ref[...]))

    h_out_ref[...] = h_fin
    c_out_ref[...] = c_fin


def decoder_forward(sent, h, c, params, *, max_len):
    """Pallas-backed equivalent of Decoder.forward.

    sent : int (1, seq_len)  token ids (batch must be 1, as in the module)
    h, c : f32 (1, 1, hidden) LSTM states
    Returns (outputs[max_len, hidden], h, c).
    """
    assert sent.shape[0] == 1, "module semantics imply batch == 1"
    hidden = params["w_hh_t"].shape[0]
    vocab = params["embed"].shape[0]
    seq_len = int(sent.shape[1])
    eff_len = min(seq_len, max_len)

    # Fixed-shape token buffer: every sentence length shares the same kernel
    # (recurrence length is a runtime SMEM scalar); tail is PAD_token whose
    # embedding row is zero, and those rows are never used by the recurrence.
    ids = jnp.zeros((max_len,), jnp.int32).at[:eff_len].set(
        sent[0, :eff_len].astype(jnp.int32))
    n = jnp.array([eff_len], jnp.int32)

    h0 = h.reshape(1, hidden).astype(jnp.float32)
    c0 = c.reshape(1, hidden).astype(jnp.float32)

    smem = pl.BlockSpec(memory_space=pltpu.MemorySpace.SMEM)
    vmem = pl.BlockSpec(memory_space=pltpu.MemorySpace.VMEM)

    kernel = functools.partial(_lstm_decoder_kernel,
                               max_len=max_len, hidden=hidden)

    # VMEM budget derived from the actual buffers, with a factor for
    # (8,128)/(16,128) tile padding and fixed headroom for Mosaic-internal
    # scratch.  Re-derive if hidden/max_len are scaled up; the physical
    # ceiling is 64 MiB on v7x (128 MiB on v5e/v6e).
    def nbytes(shape, dtype):
        return math.prod(shape) * jnp.dtype(dtype).itemsize

    raw = (nbytes((vocab, hidden), jnp.float32)               # embed table
           + 2 * nbytes((hidden, 4 * hidden), jnp.bfloat16)   # w_ih_t, w_hh_t
           + nbytes((1, 4 * hidden), jnp.float32)             # bias
           + 4 * nbytes((1, hidden), jnp.float32)             # h0,c0,h_out,c_out
           + nbytes((max_len, hidden), jnp.float32)           # outputs
           + nbytes((max_len, hidden), jnp.float32)           # x scratch
           + nbytes((max_len, 4 * hidden), jnp.float32))      # x_gates scratch
    vmem_limit_bytes = int(min(8 * raw + (2 << 20), 64 << 20))

    outputs, h_fin, c_fin = pl.pallas_call(
        kernel,
        out_shape=(
            jax.ShapeDtypeStruct((max_len, hidden), jnp.float32),
            jax.ShapeDtypeStruct((1, hidden), jnp.float32),
            jax.ShapeDtypeStruct((1, hidden), jnp.float32),
        ),
        in_specs=[smem, smem, vmem, vmem, vmem, vmem, vmem, vmem],
        out_specs=(vmem, vmem, vmem),
        scratch_shapes=[
            pltpu.VMEM((max_len, hidden), jnp.float32),
            pltpu.VMEM((max_len, 4 * hidden), jnp.float32),
        ],
        compiler_params=pltpu.CompilerParams(
            vmem_limit_bytes=vmem_limit_bytes),
    )(ids, n, params["embed"], params["w_ih_t"], params["w_hh_t"],
      params["bias"], h0, c0)

    return outputs, h_fin.reshape(1, 1, hidden), c_fin.reshape(1, 1, hidden)


def init_decoder_params(key, vocab, hidden):
    """Deterministic init mirroring nn.Embedding / nn.LSTM, stored in the
    kernel-friendly layout: weights pre-transposed and cast to bf16 (MXU
    operand dtype), biases pre-combined, embedding kept f32 for cheap
    per-row gather and exact PAD-row zeros."""
    k_e, k_wi, k_wh, k_bi, k_bh = jax.random.split(key, 5)
    bound = 1.0 / math.sqrt(hidden)
    embed = jax.random.normal(k_e, (vocab, hidden), jnp.float32)
    embed = embed.at[PAD_token].set(0.0)                      # padding_idx row
    w_ih = jax.random.uniform(k_wi, (4 * hidden, hidden), jnp.float32,
                              -bound, bound)                  # torch layout
    w_hh = jax.random.uniform(k_wh, (4 * hidden, hidden), jnp.float32,
                              -bound, bound)
    b_ih = jax.random.uniform(k_bi, (4 * hidden,), jnp.float32, -bound, bound)
    b_hh = jax.random.uniform(k_bh, (4 * hidden,), jnp.float32, -bound, bound)
    return {
        "embed": embed,                                       # (V, H)  f32
        "w_ih_t": jnp.asarray(w_ih.T, jnp.bfloat16),          # (H, 4H) bf16
        "w_hh_t": jnp.asarray(w_hh.T, jnp.bfloat16),          # (H, 4H) bf16
        "bias": (b_ih + b_hh).reshape(1, -1),                 # (1, 4H) f32
    }


def _reference_forward(sent, h, c, params, *, max_len):
    """Pure-JAX reference with the identical bf16-operand / f32-accumulate
    arithmetic, for a correctness check."""
    hidden = params["w_hh_t"].shape[0]
    seq_len = min(sent.shape[1], max_len)
    wih_t = params["w_ih_t"]
    whh_t = params["w_hh_t"]
    bias = params["bias"]
    x = params["embed"][sent[0, :seq_len]].astype(jnp.bfloat16)
    x_gates = jnp.dot(x, wih_t, preferred_element_type=jnp.float32) + bias
    h_t = h.reshape(1, hidden).astype(jnp.float32)
    c_t = c.reshape(1, hidden).astype(jnp.float32)
    outs = jnp.zeros((max_len, hidden), jnp.float32)
    for t in range(seq_len):
        gates = x_gates[t:t + 1, :] + jnp.dot(
            h_t.astype(jnp.bfloat16), whh_t,
            preferred_element_type=jnp.float32)
        i_g = jax.nn.sigmoid(gates[:, 0 * hidden:1 * hidden])
        f_g = jax.nn.sigmoid(gates[:, 1 * hidden:2 * hidden])
        g_g = jnp.tanh(gates[:, 2 * hidden:3 * hidden])
        o_g = jax.nn.sigmoid(gates[:, 3 * hidden:4 * hidden])
        c_t = f_g * c_t + i_g * g_g
        h_t = o_g * jnp.tanh(c_t)
        outs = outs.at[t].set(h_t[0])
    return outs, h_t.reshape(1, 1, hidden), c_t.reshape(1, 1, hidden)


if __name__ == "__main__":
    # Small shapes consistent with the module: batch=1, seq=8, hidden=32,
    # vocab=50, max_len=16 (embedding_dim == hidden_size, as the LSTM requires).
    VOCAB, HIDDEN, SEQ, MAX_LEN = 50, 32, 8, 16

    key = jax.random.PRNGKey(0)
    k_params, k_sent, k_h, k_c = jax.random.split(key, 4)

    params = init_decoder_params(k_params, VOCAB, HIDDEN)
    sent = jax.random.randint(k_sent, (1, SEQ), 1, VOCAB, dtype=jnp.int32)
    h0 = jax.random.normal(k_h, (1, 1, HIDDEN), jnp.float32)
    c0 = jax.random.normal(k_c, (1, 1, HIDDEN), jnp.float32)

    ok = True
    # Exercise two different sentence lengths through the same kernel
    # (runtime seq_len; the second call also checks tail zeroing).
    for test_seq in (SEQ, 5):
        s = sent[:, :test_seq]
        outputs, h_fin, c_fin = decoder_forward(s, h0, c0, params,
                                                max_len=MAX_LEN)
        jax.block_until_ready((outputs, h_fin, c_fin))

        ref_out, ref_h, ref_c = _reference_forward(s, h0, c0, params,
                                                   max_len=MAX_LEN)
        ok &= bool(jnp.allclose(outputs, ref_out, atol=1e-4))
        ok &= bool(jnp.allclose(h_fin, ref_h, atol=1e-4))
        ok &= bool(jnp.allclose(c_fin, ref_c, atol=1e-4))

    assert ok, "Pallas kernel does not match the pure-JAX reference"
    print("KERNEL_OK")
</pallas_src>

<mosaic_0001>
module attributes {stable_mosaic.version = 11 : i64} {
  func.func @_lstm_decoder_kernel(%arg0: memref<16xi32, #tpu.memory_space<smem>>, %arg1: memref<1xi32, #tpu.memory_space<smem>>, %arg2: memref<50x32xf32, #tpu.memory_space<vmem>>, %arg3: memref<32x128xbf16, #tpu.memory_space<vmem>>, %arg4: memref<32x128xbf16, #tpu.memory_space<vmem>>, %arg5: memref<1x128xf32, #tpu.memory_space<vmem>>, %arg6: memref<1x32xf32, #tpu.memory_space<vmem>>, %arg7: memref<1x32xf32, #tpu.memory_space<vmem>>, %arg8: memref<16x32xf32, #tpu.memory_space<vmem>>, %arg9: memref<1x32xf32, #tpu.memory_space<vmem>>, %arg10: memref<1x32xf32, #tpu.memory_space<vmem>>, %arg11: memref<16x32xf32, #tpu.memory_space<vmem>>, %arg12: memref<16x128xf32, #tpu.memory_space<vmem>>) attributes {dimension_semantics = [], scalar_prefetch = 0 : i64, scratch_operands = 2 : i64, tpu.core_type = #tpu.core_type<tc>} {
    %cst = arith.constant 0.000000e+00 : f32
    %0 = vector.broadcast %cst : f32 to vector<16x32xf32>
    %c0 = arith.constant 0 : index
    %c0_0 = arith.constant 0 : index
    %1 = vector.load %arg8[%c0, %c0_0] : memref<16x32xf32, #tpu.memory_space<vmem>>, vector<16x32xf32>
    tpu.vector_store %arg8[%c0, %c0_0], %0 {strides = array<i32>} : memref<16x32xf32, #tpu.memory_space<vmem>>, vector<16x32xf32>,
    %c0_1 = arith.constant 0 : index
    %2 = memref.load %arg0[%c0_1] : memref<16xi32, #tpu.memory_space<smem>>
    %3 = arith.index_cast %2 : i32 to index
    %c0_2 = arith.constant 0 : index
    %4 = vector.load %arg2[%3, %c0_2] : memref<50x32xf32, #tpu.memory_space<vmem>>, vector<1x32xf32>
    %c0_3 = arith.constant 0 : index
    %c0_4 = arith.constant 0 : index
    %5 = vector.load %arg11[%c0_3, %c0_4] : memref<16x32xf32, #tpu.memory_space<vmem>>, vector<1x32xf32>
    tpu.vector_store %arg11[%c0_3, %c0_4], %4 {strides = array<i32>} : memref<16x32xf32, #tpu.memory_space<vmem>>, vector<1x32xf32>,
    %c1 = arith.constant 1 : index
    %6 = memref.load %arg0[%c1] : memref<16xi32, #tpu.memory_space<smem>>
    %7 = arith.index_cast %6 : i32 to index
    %c0_5 = arith.constant 0 : index
    %8 = vector.load %arg2[%7, %c0_5] : memref<50x32xf32, #tpu.memory_space<vmem>>, vector<1x32xf32>
    %c1_6 = arith.constant 1 : index
    %c0_7 = arith.constant 0 : index
    %9 = vector.load %arg11[%c1_6, %c0_7] : memref<16x32xf32, #tpu.memory_space<vmem>>, vector<1x32xf32>
    tpu.vector_store %arg11[%c1_6, %c0_7], %8 {strides = array<i32>} : memref<16x32xf32, #tpu.memory_space<vmem>>, vector<1x32xf32>,
    %c2 = arith.constant 2 : index
    %10 = memref.load %arg0[%c2] : memref<16xi32, #tpu.memory_space<smem>>
    %11 = arith.index_cast %10 : i32 to index
    %c0_8 = arith.constant 0 : index
    %12 = vector.load %arg2[%11, %c0_8] : memref<50x32xf32, #tpu.memory_space<vmem>>, vector<1x32xf32>
    %c2_9 = arith.constant 2 : index
    %c0_10 = arith.constant 0 : index
    %13 = vector.load %arg11[%c2_9, %c0_10] : memref<16x32xf32, #tpu.memory_space<vmem>>, vector<1x32xf32>
    tpu.vector_store %arg11[%c2_9, %c0_10], %12 {strides = array<i32>} : memref<16x32xf32, #tpu.memory_space<vmem>>, vector<1x32xf32>,
    %c3 = arith.constant 3 : index
    %14 = memref.load %arg0[%c3] : memref<16xi32, #tpu.memory_space<smem>>
    %15 = arith.index_cast %14 : i32 to index
    %c0_11 = arith.constant 0 : index
    %16 = vector.load %arg2[%15, %c0_11] : memref<50x32xf32, #tpu.memory_space<vmem>>, vector<1x32xf32>
    %c3_12 = arith.constant 3 : index
    %c0_13 = arith.constant 0 : index
    %17 = vector.load %arg11[%c3_12, %c0_13] : memref<16x32xf32, #tpu.memory_space<vmem>>, vector<1x32xf32>
    tpu.vector_store %arg11[%c3_12, %c0_13], %16 {strides = array<i32>} : memref<16x32xf32, #tpu.memory_space<vmem>>, vector<1x32xf32>,
    %c4 = arith.constant 4 : index
    %18 = memref.load %arg0[%c4] : memref<16xi32, #tpu.memory_space<smem>>
    %19 = arith.index_cast %18 : i32 to index
    %c0_14 = arith.constant 0 : index
    %20 = vector.load %arg2[%19, %c0_14] : memref<50x32xf32, #tpu.memory_space<vmem>>, vector<1x32xf32>
    %c4_15 = arith.constant 4 : index
    %c0_16 = arith.constant 0 : index
    %21 = vector.load %arg11[%c4_15, %c0_16] : memref<16x32xf32, #tpu.memory_space<vmem>>, vector<1x32xf32>
    tpu.vector_store %arg11[%c4_15, %c0_16], %20 {strides = array<i32>} : memref<16x32xf32, #tpu.memory_space<vmem>>, vector<1x32xf32>,
    %c5 = arith.constant 5 : index
    %22 = memref.load %arg0[%c5] : memref<16xi32, #tpu.memory_space<smem>>
    %23 = arith.index_cast %22 : i32 to index
    %c0_17 = arith.constant 0 : index
    %24 = vector.load %arg2[%23, %c0_17] : memref<50x32xf32, #tpu.memory_space<vmem>>, vector<1x32xf32>
    %c5_18 = arith.constant 5 : index
    %c0_19 = arith.constant 0 : index
    %25 = vector.load %arg11[%c5_18, %c0_19] : memref<16x32xf32, #tpu.memory_space<vmem>>, vector<1x32xf32>
    tpu.vector_store %arg11[%c5_18, %c0_19], %24 {strides = array<i32>} : memref<16x32xf32, #tpu.memory_space<vmem>>, vector<1x32xf32>,
    %c6 = arith.constant 6 : index
    %26 = memref.load %arg0[%c6] : memref<16xi32, #tpu.memory_space<smem>>
    %27 = arith.index_cast %26 : i32 to index
    %c0_20 = arith.constant 0 : index
    %28 = vector.load %arg2[%27, %c0_20] : memref<50x32xf32, #tpu.memory_space<vmem>>, vector<1x32xf32>
    %c6_21 = arith.constant 6 : index
    %c0_22 = arith.constant 0 : index
    %29 = vector.load %arg11[%c6_21, %c0_22] : memref<16x32xf32, #tpu.memory_space<vmem>>, vector<1x32xf32>
    tpu.vector_store %arg11[%c6_21, %c0_22], %28 {strides = array<i32>} : memref<16x32xf32, #tpu.memory_space<vmem>>, vector<1x32xf32>,
    %c7 = arith.constant 7 : index
    %30 = memref.load %arg0[%c7] : memref<16xi32, #tpu.memory_space<smem>>
    %31 = arith.index_cast %30 : i32 to index
    %c0_23 = arith.constant 0 : index
    %32 = vector.load %arg2[%31, %c0_23] : memref<50x32xf32, #tpu.memory_space<vmem>>, vector<1x32xf32>
    %c7_24 = arith.constant 7 : index
    %c0_25 = arith.constant 0 : index
    %33 = vector.load %arg11[%c7_24, %c0_25] : memref<16x32xf32, #tpu.memory_space<vmem>>, vector<1x32xf32>
    tpu.vector_store %arg11[%c7_24, %c0_25], %32 {strides = array<i32>} : memref<16x32xf32, #tpu.memory_space<vmem>>, vector<1x32xf32>,
    %c8 = arith.constant 8 : index
    %34 = memref.load %arg0[%c8] : memref<16xi32, #tpu.memory_space<smem>>
    %35 = arith.index_cast %34 : i32 to index
    %c0_26 = arith.constant 0 : index
    %36 = vector.load %arg2[%35, %c0_26] : memref<50x32xf32, #tpu.memory_space<vmem>>, vector<1x32xf32>
    %c8_27 = arith.constant 8 : index
    %c0_28 = arith.constant 0 : index
    %37 = vector.load %arg11[%c8_27, %c0_28] : memref<16x32xf32, #tpu.memory_space<vmem>>, vector<1x32xf32>
    tpu.vector_store %arg11[%c8_27, %c0_28], %36 {strides = array<i32>} : memref<16x32xf32, #tpu.memory_space<vmem>>, vector<1x32xf32>,
    %c9 = arith.constant 9 : index
    %38 = memref.load %arg0[%c9] : memref<16xi32, #tpu.memory_space<smem>>
    %39 = arith.index_cast %38 : i32 to index
    %c0_29 = arith.constant 0 : index
    %40 = vector.load %arg2[%39, %c0_29] : memref<50x32xf32, #tpu.memory_space<vmem>>, vector<1x32xf32>
    %c9_30 = arith.constant 9 : index
    %c0_31 = arith.constant 0 : index
    %41 = vector.load %arg11[%c9_30, %c0_31] : memref<16x32xf32, #tpu.memory_space<vmem>>, vector<1x32xf32>
    tpu.vector_store %arg11[%c9_30, %c0_31], %40 {strides = array<i32>} : memref<16x32xf32, #tpu.memory_space<vmem>>, vector<1x32xf32>,
    %c10 = arith.constant 10 : index
    %42 = memref.load %arg0[%c10] : memref<16xi32, #tpu.memory_space<smem>>
    %43 = arith.index_cast %42 : i32 to index
    %c0_32 = arith.constant 0 : index
    %44 = vector.load %arg2[%43, %c0_32] : memref<50x32xf32, #tpu.memory_space<vmem>>, vector<1x32xf32>
    %c10_33 = arith.constant 10 : index
    %c0_34 = arith.constant 0 : index
    %45 = vector.load %arg11[%c10_33, %c0_34] : memref<16x32xf32, #tpu.memory_space<vmem>>, vector<1x32xf32>
    tpu.vector_store %arg11[%c10_33, %c0_34], %44 {strides = array<i32>} : memref<16x32xf32, #tpu.memory_space<vmem>>, vector<1x32xf32>,
    %c11 = arith.constant 11 : index
    %46 = memref.load %arg0[%c11] : memref<16xi32, #tpu.memory_space<smem>>
    %47 = arith.index_cast %46 : i32 to index
    %c0_35 = arith.constant 0 : index
    %48 = vector.load %arg2[%47, %c0_35] : memref<50x32xf32, #tpu.memory_space<vmem>>, vector<1x32xf32>
    %c11_36 = arith.constant 11 : index
    %c0_37 = arith.constant 0 : index
    %49 = vector.load %arg11[%c11_36, %c0_37] : memref<16x32xf32, #tpu.memory_space<vmem>>, vector<1x32xf32>
    tpu.vector_store %arg11[%c11_36, %c0_37], %48 {strides = array<i32>} : memref<16x32xf32, #tpu.memory_space<vmem>>, vector<1x32xf32>,
    %c12 = arith.constant 12 : index
    %50 = memref.load %arg0[%c12] : memref<16xi32, #tpu.memory_space<smem>>
    %51 = arith.index_cast %50 : i32 to index
    %c0_38 = arith.constant 0 : index
    %52 = vector.load %arg2[%51, %c0_38] : memref<50x32xf32, #tpu.memory_space<vmem>>, vector<1x32xf32>
    %c12_39 = arith.constant 12 : index
    %c0_40 = arith.constant 0 : index
    %53 = vector.load %arg11[%c12_39, %c0_40] : memref<16x32xf32, #tpu.memory_space<vmem>>, vector<1x32xf32>
    tpu.vector_store %arg11[%c12_39, %c0_40], %52 {strides = array<i32>} : memref<16x32xf32, #tpu.memory_space<vmem>>, vector<1x32xf32>,
    %c13 = arith.constant 13 : index
    %54 = memref.load %arg0[%c13] : memref<16xi32, #tpu.memory_space<smem>>
    %55 = arith.index_cast %54 : i32 to index
    %c0_41 = arith.constant 0 : index
    %56 = vector.load %arg2[%55, %c0_41] : memref<50x32xf32, #tpu.memory_space<vmem>>, vector<1x32xf32>
    %c13_42 = arith.constant 13 : index
    %c0_43 = arith.constant 0 : index
    %57 = vector.load %arg11[%c13_42, %c0_43] : memref<16x32xf32, #tpu.memory_space<vmem>>, vector<1x32xf32>
    tpu.vector_store %arg11[%c13_42, %c0_43], %56 {strides = array<i32>} : memref<16x32xf32, #tpu.memory_space<vmem>>, vector<1x32xf32>,
    %c14 = arith.constant 14 : index
    %58 = memref.load %arg0[%c14] : memref<16xi32, #tpu.memory_space<smem>>
    %59 = arith.index_cast %58 : i32 to index
    %c0_44 = arith.constant 0 : index
    %60 = vector.load %arg2[%59, %c0_44] : memref<50x32xf32, #tpu.memory_space<vmem>>, vector<1x32xf32>
    %c14_45 = arith.constant 14 : index
    %c0_46 = arith.constant 0 : index
    %61 = vector.load %arg11[%c14_45, %c0_46] : memref<16x32xf32, #tpu.memory_space<vmem>>, vector<1x32xf32>
    tpu.vector_store %arg11[%c14_45, %c0_46], %60 {strides = array<i32>} : memref<16x32xf32, #tpu.memory_space<vmem>>, vector<1x32xf32>,
    %c15 = arith.constant 15 : index
    %62 = memref.load %arg0[%c15] : memref<16xi32, #tpu.memory_space<smem>>
    %63 = arith.index_cast %62 : i32 to index
    %c0_47 = arith.constant 0 : index
    %64 = vector.load %arg2[%63, %c0_47] : memref<50x32xf32, #tpu.memory_space<vmem>>, vector<1x32xf32>
    %c15_48 = arith.constant 15 : index
    %c0_49 = arith.constant 0 : index
    %65 = vector.load %arg11[%c15_48, %c0_49] : memref<16x32xf32, #tpu.memory_space<vmem>>, vector<1x32xf32>
    tpu.vector_store %arg11[%c15_48, %c0_49], %64 {strides = array<i32>} : memref<16x32xf32, #tpu.memory_space<vmem>>, vector<1x32xf32>,
    %c0_50 = arith.constant 0 : index
    %c0_51 = arith.constant 0 : index
    %66 = vector.load %arg11[%c0_50, %c0_51] : memref<16x32xf32, #tpu.memory_space<vmem>>, vector<16x32xf32>
    %67 = arith.truncf %66 : vector<16x32xf32> to vector<16x32xbf16>
    %c0_52 = arith.constant 0 : index
    %c0_53 = arith.constant 0 : index
    %68 = vector.load %arg3[%c0_52, %c0_53] : memref<32x128xbf16, #tpu.memory_space<vmem>>, vector<32x128xbf16>
    %cst_54 = arith.constant dense<0.000000e+00> : vector<16x128xf32>
    %69 = tpu.matmul %67, %68, %cst_54 {dimension_numbers = #tpu.dot_dimension_numbers<[1], [0], [0], [1], [0, 0, 1, 1], [], []>} : vector<16x32xbf16>, vector<32x128xbf16>, vector<16x128xf32> -> vector<16x128xf32>
    %c0_55 = arith.constant 0 : index
    %c0_56 = arith.constant 0 : index
    %70 = vector.load %arg5[%c0_55, %c0_56] : memref<1x128xf32, #tpu.memory_space<vmem>>, vector<1x128xf32>
    %71 = vector.broadcast %70 : vector<1x128xf32> to vector<16x128xf32>
    %72 = arith.addf %69, %71 : vector<16x128xf32>
    %c0_57 = arith.constant 0 : index
    %c0_58 = arith.constant 0 : index
    %73 = vector.load %arg12[%c0_57, %c0_58] : memref<16x128xf32, #tpu.memory_space<vmem>>, vector<16x128xf32>
    tpu.vector_store %arg12[%c0_57, %c0_58], %72 {strides = array<i32>} : memref<16x128xf32, #tpu.memory_space<vmem>>, vector<16x128xf32>,
    %c0_59 = arith.constant 0 : index
    %c0_60 = arith.constant 0 : index
    %74 = vector.load %arg4[%c0_59, %c0_60] : memref<32x128xbf16, #tpu.memory_space<vmem>>, vector<32x128xbf16>
    %c0_61 = arith.constant 0 : index
    %75 = memref.load %arg1[%c0_61] : memref<1xi32, #tpu.memory_space<smem>>
    %c16_i32 = arith.constant 16 : i32
    %76 = arith.minsi %75, %c16_i32 : i32
    %c0_62 = arith.constant 0 : index
    %c0_63 = arith.constant 0 : index
    %77 = vector.load %arg6[%c0_62, %c0_63] : memref<1x32xf32, #tpu.memory_space<vmem>>, vector<1x32xf32>
    %c0_64 = arith.constant 0 : index
    %c0_65 = arith.constant 0 : index
    %78 = vector.load %arg7[%c0_64, %c0_65] : memref<1x32xf32, #tpu.memory_space<vmem>>, vector<1x32xf32>
    %c0_i32 = arith.constant 0 : i32
    %79 = arith.subi %76, %c0_i32 : i32
    %80 = arith.addi %c0_i32, %79 : i32
    %c1_i32 = arith.constant 1 : i32
    %81:2 = scf.for %arg13 = %c0_i32 to %80 step %c1_i32 iter_args(%arg14 = %77, %arg15 = %78) -> (vector<1x32xf32>, vector<1x32xf32>)  : i32 {
      %84 = arith.index_cast %arg13 : i32 to index
      %c0_70 = arith.constant 0 : index
      %85 = vector.load %arg12[%84, %c0_70] : memref<16x128xf32, #tpu.memory_space<vmem>>, vector<1x128xf32>
      %86 = arith.truncf %arg14 : vector<1x32xf32> to vector<1x32xbf16>
      %cst_71 = arith.constant dense<0.000000e+00> : vector<1x128xf32>
      %87 = tpu.matmul %86, %74, %cst_71 {dimension_numbers = #tpu.dot_dimension_numbers<[1], [0], [0], [1], [0, 0, 1, 1], [], []>} : vector<1x32xbf16>, vector<32x128xbf16>, vector<1x128xf32> -> vector<1x128xf32>
      %88 = arith.addf %85, %87 : vector<1x128xf32>
      %89 = arith.negf %88 : vector<1x128xf32>
      %90 = math.exp %89 : vector<1x128xf32>
      %cst_72 = arith.constant 1.000000e+00 : f32
      %91 = vector.broadcast %cst_72 : f32 to vector<1x128xf32>
      %92 = arith.addf %91, %90 : vector<1x128xf32>
      %93 = arith.divf %91, %92 : vector<1x128xf32>
      %94 = math.tanh %88 : vector<1x128xf32>
      %95 = vector.extract_strided_slice %93 {offsets = [0, 0], sizes = [1, 32], strides = [1, 1]} : vector<1x128xf32> to vector<1x32xf32>
      %96 = vector.extract_strided_slice %93 {offsets = [0, 32], sizes = [1, 32], strides = [1, 1]} : vector<1x128xf32> to vector<1x32xf32>
      %97 = vector.extract_strided_slice %94 {offsets = [0, 64], sizes = [1, 32], strides = [1, 1]} : vector<1x128xf32> to vector<1x32xf32>
      %98 = vector.extract_strided_slice %93 {offsets = [0, 96], sizes = [1, 32], strides = [1, 1]} : vector<1x128xf32> to vector<1x32xf32>
      %99 = arith.mulf %96, %arg15 : vector<1x32xf32>
      %100 = arith.mulf %95, %97 : vector<1x32xf32>
      %101 = arith.addf %99, %100 : vector<1x32xf32>
      %102 = math.tanh %101 : vector<1x32xf32>
      %103 = arith.mulf %98, %102 : vector<1x32xf32>
      %104 = arith.index_cast %arg13 : i32 to index
      %c0_73 = arith.constant 0 : index
      %105 = vector.load %arg8[%104, %c0_73] : memref<16x32xf32, #tpu.memory_space<vmem>>, vector<1x32xf32>
      tpu.vector_store %arg8[%104, %c0_73], %103 {strides = array<i32>} : memref<16x32xf32, #tpu.memory_space<vmem>>, vector<1x32xf32>,
      scf.yield %103, %101 : vector<1x32xf32>, vector<1x32xf32>
    }
    %c0_66 = arith.constant 0 : index
    %c0_67 = arith.constant 0 : index
    %82 = vector.load %arg9[%c0_66, %c0_67] : memref<1x32xf32, #tpu.memory_space<vmem>>, vector<1x32xf32>
    tpu.vector_store %arg9[%c0_66, %c0_67], %81#0 {strides = array<i32>} : memref<1x32xf32, #tpu.memory_space<vmem>>, vector<1x32xf32>,
    %c0_68 = arith.constant 0 : index
    %c0_69 = arith.constant 0 : index
    %83 = vector.load %arg10[%c0_68, %c0_69] : memref<1x32xf32, #tpu.memory_space<vmem>>, vector<1x32xf32>
    tpu.vector_store %arg10[%c0_68, %c0_69], %81#1 {strides = array<i32>} : memref<1x32xf32, #tpu.memory_space<vmem>>, vector<1x32xf32>,
    return
  }
}

</mosaic_0001>

<bundles_post_ra>
// kernel: tpu_custom_call.1
= control target key start
LH: loop header
LB: loop body
LE: loop exit
PB: predicated region body
PF: predicated region fallthrough
CT: control target
= control target key end

     0   :  { %17 = vsyncpa [#allocation7], 0  ;;  %s805_s0 = inlined_call_operand.vmem [shape: s32[16], index: 0, kind: input, shape index: {}]   ;;  %s806_s1 = inlined_call_operand.<no memory space> [shape: s32[1], index: 1, kind: input, shape index: {}]   ;;  %s807_s2 = inlined_call_operand.vmem [shape: f32[50,32], index: 2, kind: input, shape index: {}]   ;;  %s808_s3 = inlined_call_operand.vmem [shape: bf16[32,128], index: 3, kind: input, shape index: {}]   ;;  %s809_s4 = inlined_call_operand.vmem [shape: bf16[32,128], index: 4, kind: input, shape index: {}]   ;;  %s810_s5 = inlined_call_operand.vmem [shape: f32[1,128], index: 5, kind: input, shape index: {}]   ;;  %s811_s6 = inlined_call_operand.vmem [shape: f32[1,32], index: 6, kind: input, shape index: {}]   ;;  %s812_s7 = inlined_call_operand.vmem [shape: f32[1,32], index: 7, kind: input, shape index: {}]   ;;  %s813_s8 = inlined_call_operand.hbm [shape: f32[16,32], index: 8, kind: output, shape index: {0}]   ;;  %s814_s9 = inlined_call_operand.hbm [shape: f32[1,32], index: 9, kind: output, shape index: {1}]   ;;  %s815_s10 = inlined_call_operand.hbm [shape: f32[1,32], index: 10, kind: output, shape index: {2}]  }
   0x1   :  { %18 = vsyncpa [#allocation6], 0 }
   0x2   :  { %19 = vsyncpa [#allocation10], 0  ;;  %s25_s15 = sshll.u32 %s805_s0, 4  ;;  %s571_s16 = smov [#allocation5]   ;;  %s26_s15 = int_to_ptr.vmem [resolvable:$true] %s25_s15 }
   0x3   :  { %28 = dma.vmem_to_smem %s26_s15, 16, %s571_s16, [#allocation7]  }
   0x4   :  { %545 = dma.done.wait [#allocation7], 16  }
   0x5   :  { %546 = vsyncadd [#allocation7], 4294967280 }
   0x6   :  { %47 = sfence }
   0x7   :  { %v376_v0 = vld [vmem:[%s808_s3 + $0x8] sm:$0xff]  ;;  %vm49_vm0 = vcmask 261120   ;;  %s52_s19 = sld [smem:[#allocation5]]  ;;  %v572_v1 = vmov 0.0   ;;  %v375_v2 = vld [vmem:[%s808_s3] sm:$0xff]  ;;  %vm55_vm1 = vcmask 253952  }
   0x8   :  { %50 = vst.msk [vmem:[#allocation8] sm:$0xff] %vm49_vm0, %v572_v1  ;;  %s340_s20 = sld [smem:[#allocation5 + $0x1]]  ;;  %149 = vmatpush.bf16.msra.mxu0 %v376_v0  ;;  %p164_p0 = scmp.lt.s32.totalorder %s806_s1, 16  ;;  %v723_v22 = vld [vmem:[%s809_s4] sm:$0xf] }
   0x9   :  { %51 = vst.msk [vmem:[#allocation8 + $0x8] sm:$0xff] %vm49_vm0, %v572_v1  ;;  %s341_s0 = sld [smem:[#allocation5 + $0x2]]  ;;  %v728_v23 = vld [vmem:[%s809_s4] sm:$0xf0]  ;;  %v733_v24 = vld [vmem:[%s809_s4 + $0x8] sm:$0xf] }
   0xa   :  { %s342_s23 = sld [smem:[#allocation5 + $0x3]]  ;;  %v738_v25 = vld [vmem:[%s809_s4 + $0x8] sm:$0xf0]  ;;  %v166_v26 = vld [vmem:[%s811_s6] sm:$0x1]   ;;  %p379_p1 = scmp.le.s32.totalorder %s806_s1, 0 }
   0xb   :  { %s343_s24 = sld [smem:[#allocation5 + $0x4]]  ;;  %v167_v27 = vld [vmem:[%s812_s7] sm:$0x1]   ;;  %v817_v34 = vmov %v166_v26 }
   0xc   :  { %s344_s25 = sld [smem:[#allocation5 + $0x5]]  ;;  %150 = vmatpush.bf16.msra.mxu0 %v375_v2  ;;  %v432_v28 = vld [vmem:[%s810_s5] ss:$0 sm:$0xff]  ;;  %v816_v33 = vmov %v167_v27  ;;  %s760_s5 = smov (!%p379_p1), 0  }
   0xd   :  { %s53_s28 = scalar_lea.vmem %s807_s2, %s52_s19  ;;  %s345_s29 = sld [smem:[#allocation5 + $0x6]] }
   0xe   :  { %v54_v3 = vld [vmem:[%s53_s28] sm:$0x1]  ;;  %s58_s12 = scalar_lea.vmem %s807_s2, %s340_s20  ;;  %s346_s13 = sld [smem:[#allocation5 + $0x7]] }
   0xf   :  { %56 = vst.msk [vmem:[#allocation2] sm:$0x1] %vm55_vm1, %v54_v3  ;;  %v59_v4 = vld [vmem:[%s58_s12] sm:$0x1]  ;;  %s62_s15 = scalar_lea.vmem %s807_s2, %s341_s0  ;;  %s347_s16 = sld [smem:[#allocation5 + $0x8]] }
  0x10   :  { %60 = vst.msk [vmem:[#allocation2 + $0x1] sm:$0x1] %vm55_vm1, %v59_v4  ;;  %v63_v5 = vld [vmem:[%s62_s15] sm:$0x1]  ;;  %s66_s19 = scalar_lea.vmem %s807_s2, %s342_s23  ;;  %s348_s21 = sld [smem:[#allocation5 + $0x9]] }
  0x11   :  { %64 = vst.msk [vmem:[#allocation2 + $0x2] sm:$0x1] %vm55_vm1, %v63_v5  ;;  %v67_v6 = vld [vmem:[%s66_s19] sm:$0x1]  ;;  %s70_s26 = scalar_lea.vmem %s807_s2, %s343_s24  ;;  %s349_s27 = sld [smem:[#allocation5 + $0xa]] }
  0x12   :  { %68 = vst.msk [vmem:[#allocation2 + $0x3] sm:$0x1] %vm55_vm1, %v67_v6  ;;  %v71_v7 = vld [vmem:[%s70_s26] sm:$0x1]  ;;  %s74_s30 = scalar_lea.vmem %s807_s2, %s344_s25  ;;  %s350_s11 = sld [smem:[#allocation5 + $0xb]] }
  0x13   :  { %72 = vst.msk [vmem:[#allocation2 + $0x4] sm:$0x1] %vm55_vm1, %v71_v7  ;;  %v75_v8 = vld [vmem:[%s74_s30] sm:$0x1]  ;;  %s78_s3 = scalar_lea.vmem %s807_s2, %s345_s29  ;;  %s351_s14 = sld [smem:[#allocation5 + $0xc]] }
  0x14   :  { %76 = vst.msk [vmem:[#allocation2 + $0x5] sm:$0x1] %vm55_vm1, %v75_v8  ;;  %v79_v9 = vld [vmem:[%s78_s3] sm:$0x1]  ;;  %s82_s17 = scalar_lea.vmem %s807_s2, %s346_s13  ;;  %s352_s18 = sld [smem:[#allocation5 + $0xd]] }
  0x15   :  { %80 = vst.msk [vmem:[#allocation2 + $0x6] sm:$0x1] %vm55_vm1, %v79_v9  ;;  %v83_v10 = vld [vmem:[%s82_s17] sm:$0x1]  ;;  %s86_s20 = scalar_lea.vmem %s807_s2, %s347_s16  ;;  %s353_s22 = sld [smem:[#allocation5 + $0xe]] }
  0x16   :  { %84 = vst.msk [vmem:[#allocation2 + $0x7] sm:$0x1] %vm55_vm1, %v83_v10  ;;  %v87_v11 = vld [vmem:[%s86_s20] sm:$0x1]  ;;  %s90_s0 = scalar_lea.vmem %s807_s2, %s348_s21  ;;  %s354_s28 = sld [smem:[#allocation5 + $0xf]] }
  0x17   :  { %88 = vst.msk [vmem:[#allocation2 + $0x8] sm:$0x1] %vm55_vm1, %v87_v11  ;;  %v91_v12 = vld [vmem:[%s90_s0] sm:$0x1]  ;;  %s94_s23 = scalar_lea.vmem %s807_s2, %s349_s27 }
  0x18   :  { %92 = vst.msk [vmem:[#allocation2 + $0x9] sm:$0x1] %vm55_vm1, %v91_v12  ;;  %v95_v13 = vld [vmem:[%s94_s23] sm:$0x1]  ;;  %s98_s3 = scalar_lea.vmem %s807_s2, %s350_s11 }
  0x19   :  { %96 = vst.msk [vmem:[#allocation2 + $0xa] sm:$0x1] %vm55_vm1, %v95_v13  ;;  %v99_v14 = vld [vmem:[%s98_s3] sm:$0x1]  ;;  %s102_s15 = scalar_lea.vmem %s807_s2, %s351_s14 }
  0x1a   :  { %100 = vst.msk [vmem:[#allocation2 + $0xb] sm:$0x1] %vm55_vm1, %v99_v14  ;;  %v103_v15 = vld [vmem:[%s102_s15] sm:$0x1]  ;;  %s106_s27 = scalar_lea.vmem %s807_s2, %s352_s18 }
  0x1b   :  { %104 = vst.msk [vmem:[#allocation2 + $0xc] sm:$0x1] %vm55_vm1, %v103_v15  ;;  %v107_v16 = vld [vmem:[%s106_s27] sm:$0x1]  ;;  %s110_s11 = scalar_lea.vmem %s807_s2, %s353_s22 }
  0x1c   :  { %108 = vst.msk [vmem:[#allocation2 + $0xd] sm:$0x1] %vm55_vm1, %v107_v16  ;;  %v111_v17 = vld [vmem:[%s110_s11] sm:$0x1]  ;;  %s114_s14 = scalar_lea.vmem %s807_s2, %s354_s28 }
  0x1d   :  { %112 = vst.msk [vmem:[#allocation2 + $0xe] sm:$0x1] %vm55_vm1, %v111_v17  ;;  %v115_v18 = vld [vmem:[%s114_s14] sm:$0x1]  ;;  %s718_s30 = scalar_select %p164_p0, %s806_s1, 16 }
  0x1e   :  { %116 = vst.msk [vmem:[#allocation2 + $0xf] sm:$0x1] %vm55_vm1, %v115_v18  ;;  %v117_v19 = vld [vmem:[#allocation2] sm:$0xff] }
  0x25   :  { %v118_v20 = vld [vmem:[#allocation2 + $0x8] sm:$0xff] }
  0x26   :  { %v119_v21 = vpack.c.bf16 %v118_v20, %v117_v19 }
  0x28   :  { %363 = vmatmul.msk.bf16.vlgmr.msra.gmra.mxu0 %vm49_vm0, %v119_v21 }
  0xa5   :  { %v152_v29 = vpop.f32.mrf.mxu0 }
  0xa6   :  { %v153_v30 = vadd.f32 %v432_v28, %v152_v29 }
  0xa8   :  { %157 = vst [vmem:[#allocation3] sm:$0xff] %v153_v30 }
  0xac   :  { %333 = sbr.rel (%p379_p1) target bundleno = 779 (0x30b), region = 91 }
  0xad   :  { %v154_v31 = vpop.f32.mrf.mxu0 }
  0xae   :  { %v155_v32 = vadd.f32 %v432_v28, %v154_v31 }
  0xb0   :  { %158 = vst [vmem:[#allocation3 + $0x8] sm:$0xff] %v155_v32 }
  0xb1 LB: > { %v372_v35 = vor.u32 %v738_v25, %v733_v24  ;;  %v368_v36 = vor.u32 %v728_v23, %v723_v22  ;;  %v178_v37 = vpack.c.bf16 %v557_v26, %v557_v26  ;;  %s176_s1 = scalar_lea.vmem [#allocation3], %s561_s5  ;;  %s573_s6 = smov 64   ;;  %s561_s5 = sphi %s760_s5, %s171_s5   ;;  %v557_v26 = vphi %v166_v26, %v819_v26   ;;  %v553_v27 = vphi %v167_v27, %v818_v27  }
  0xb2   : > { %s574_s7 = smov 32   ;;  %s575_s29 = smov 96  }
  0xb3   : > { %200 = vmatpush.bf16.msra.mxu0 %v372_v35  ;;  %s253_s26 = scalar_lea.vmem [#allocation8], %s561_s5  ;;  %s171_s5 = sadd.s32 1, %s561_s5  }
  0xb4   : > { %p170_p2 = scmp.ge.s32.totalorder %s171_s5, %s718_s30 }
  0xb7   : > { %201 = vmatpush.bf16.msra.mxu0 %v368_v36  ;;  %v177_v38 = vld [vmem:[%s176_s1] sm:$0x1] }
  0xba   : > { %373 = vmatmul.msk.bf16.vlgmr.msra.gmra.mxu0 %vm49_vm0, %v178_v37 }
 0x137   : > { %v203_v39 = vpop.f32.mrf.mxu0 }
 0x138   : > { %v207_v40 = vadd.f32 %v203_v39, %v177_v38 }
 0x13a   : > { %433 = vtanh.f32 %v207_v40  ;;  %v374_v43 = vmul.f32 -1.442695, %v207_v40 }
 0x13c   : > { %435 = vpow2.f32 %v374_v43 }
 0x13f   : > { %v205_v41 = vpop.f32.mrf.mxu0 }
 0x140   : > { %v434_v42 = vpop.eup %433 }
 0x141   : > { %234 = vrot.lane.b32.xlu0 %v434_v42, %s573_s6 }
 0x142   : > { %v436_v44 = vpop.eup %435 }
 0x143   : > { %v211_v45 = vadd.f32 1.0, %v436_v44 }
 0x145   : > { %437 = vrcp.f32 %v211_v45  ;;  %v223_v51 = vand.u32 2147483648, %v211_v45  ;;  %vm217_vm3 = vweird.f32 %v211_v45  ;;  %v221_v52 = vand.u32 2147483647, %v211_v45 }
 0x147   : > { %v224_v54 = vor.u32 1.1754944e-38, %v223_v51  ;;  %vm222_vm5 = vcmp.eq.f32.partialorder %v221_v52, 8.507059e+37 }
 0x149   : > { %229 = vrot.lane.b32.xlu0 %v553_v27, %s574_s7 }
 0x14b   : > { %v438_v46 = vpop.eup %437 }
 0x14c   : > { %v213_v47 = vmul.f32 %v438_v46, %v211_v45  ;;  %vm218_vm2 = vweird.f32 %v438_v46 }
 0x14d   : > { %vm219_vm4 = vmor %vm217_vm3, %vm218_vm2 }
 0x14e   : > { %v214_v48 = vsub.f32 1.0, %v213_v47 }
 0x150   : > { %v215_v49 = vmul.f32 %v438_v46, %v214_v48 }
 0x152   : > { %v216_v50 = vadd.f32 %v438_v46, %v215_v49 }
 0x154   : > { %v220_v53 = vsel %vm219_vm4, %v438_v46, %v216_v50 }
 0x155   : > { %v225_v56 = vsel %vm222_vm5, %v224_v54, %v220_v53 }
 0x1b3   : > { %v235_v55 = vpop.permute.xlu0 %234 }
 0x1b4   : > { %v237_v57 = vmul.f32 %v235_v55, %v225_v56 }
 0x1b6   : > { %239 = vrot.lane.b32.xlu1 %v237_v57, %s574_s7 }
 0x1bb   : > { %v230_v58 = vpop.permute.xlu0 %229 }
 0x1bc   : > { %v232_v59 = vmul.f32 %v230_v58, %v225_v56 }
 0x228   : > { %v240_v60 = vpop.permute.xlu1 %239 }
 0x229   : > { %v242_v61 = vadd.f32 %v240_v60, %v232_v59 }
 0x22b   : > { %439 = vtanh.f32 %v242_v61 }
 0x231   : > { %v440_v62 = vpop.eup %439 }
 0x232   : > { %245 = vrot.lane.b32.xlu1 %v440_v62, %s573_s6 }
 0x2a4   : > { %v246_v63 = vpop.permute.xlu1 %245 }
 0x2a5   : > { %v248_v0 = vmul.f32 %v246_v63, %v225_v56 }
 0x2a7   : > { %250 = vrot.lane.b32.xlu2 %v248_v0, %s574_s7 }
 0x2af   : > { %256 = vrot.lane.b32.xlu2 %v242_v61, %s575_s29 }
 0x301   : > { %v251_v1 = vpop.permute.xlu2 %250  }
 0x302   : > { %254 = vst.msk [vmem:[%s253_s26] sm:$0x1] %vm55_vm1, %v251_v1  ;;  %v819_v26 = vmov %v251_v1  ;;  %v821_v34 = vmov (%p170_p2), %v251_v1 }
 0x306   :  { %173 = sbr.rel (!%p170_p2) target bundleno = 177 (0xb1), region = 97 }
 0x309   : > { %v257_v2 = vpop.permute.xlu2 %256  }
 0x30a   : > { %v818_v27 = vmov %v257_v2  ;;  %v820_v33 = vmov (%p170_p2), %v257_v2 }
 0x30b PF:  { %259 = vst.msk [vmem:[#allocation9] sm:$0x1] %vm55_vm1, %v569_v34  ;;  %s281_s0 = sshll.u32 %s814_s9, 4  ;;  %s576_s22 = smov [#allocation9]   ;;  %v569_v34 = vphi %v817_v34, %v821_v34   ;;  %v565_v33 = vphi %v816_v33, %v820_v33   ;;  %s282_s0 = int_to_ptr.hbm [resolvable:$true] %s281_s0 }
 0x30c   :  { %260 = vst.msk [vmem:[#allocation11] sm:$0x1] %vm55_vm1, %v565_v33  ;;  %s279_s13 = sshll.u32 %s576_s22, 4  ;;  %s577_s30 = smov [#allocation8]   ;;  %s280_s13 = int_to_ptr.vmem [resolvable:$true] %s279_s13 }
 0x30d   :  { %284 = dma.vmem_to_hbm [thread:$0]  %s280_s13, 16, %s282_s0, [#allocation10]  }
 0x30e   :  { %s265_s2 = sshll.u32 %s577_s30, 4  ;;  %s267_s16 = sshll.u32 %s813_s8, 4  ;;  %s266_s2 = int_to_ptr.vmem [resolvable:$true] %s265_s2  ;;  %s268_s16 = int_to_ptr.hbm [resolvable:$true] %s267_s16 }
 0x30f   :  { %s578_s12 = smov 128   ;;  %s579_s3 = smov 8  }
 0x310   :  { %273 = dma.vmem_to_hbm [thread:$0]  %s266_s2, 256, %s268_s16, [#allocation6], %s578_s12, %s578_s12, %s579_s3  }
 0x311   :  { %s292_s21 = sshll.u32 %s815_s10, 4  ;;  %s580_s15 = smov [#allocation11]   ;;  %s293_s21 = int_to_ptr.hbm [resolvable:$true] %s292_s21 }
 0x312   :  { %s290_s17 = sshll.u32 %s580_s15, 4  ;;  %s291_s17 = int_to_ptr.vmem [resolvable:$true] %s290_s17 }
 0x313   :  { %295 = dma.vmem_to_hbm [thread:$0]  %s291_s17, 16, %s293_s21, [#allocation10]  }
 0x314   :  { %547 = dma.done.wait [#allocation6], 256  }
 0x315   :  { %548 = vsyncadd [#allocation6], 4294967040 }
 0x316   :  { %549 = dma.done.wait [#allocation10], 32  }
 0x317   :  { %550 = vsyncadd [#allocation10], 4294967264 }
 0x318   :  { %308 = vsyncpa [#allocation6], 1 }
 0x319   :  { %309 = vsyncpa [#allocation10], 1 }
 0x31a   :  { %310 = vsyncpa [#allocation7], 1 }

</bundles_post_ra>
